<compile_context>
chip_gen: v6e
topology: v6e:2x2x1
jax: 0.10.0
libtpu: 0.0.40
codegen_flags: <defaults>
</compile_context>

<pallas_src>
import functools

import numpy as np
import jax
import jax.numpy as jnp
from jax.experimental import pallas as pl
from jax.experimental.pallas import tpu as pltpu


# ----------------------------- Pallas kernel --------------------------------
def block_kernel(x_ref, w_in_ref, b_in_ref, w_lg_ref, b_gl_ref,
                 w_out_ref, b_out_ref, o_ref, *, H, W, B):
    HW = H * W
    hdim = w_in_ref.shape[0]

    # (1, HW) spatial-validity multipliers for the 3x3 SAME-padding taps.
    # NOTE: col uses a bitwise AND, so W must be a power of two (asserted in
    # block_forward right next to this kernel's construction).
    # TODO(synk): non-power-of-two W needs col = pos % W instead of the mask.
    pos = jax.lax.broadcasted_iota(jnp.int32, (1, HW), 1)
    col = jnp.bitwise_and(pos, W - 1)
    one = jnp.float32(1.0)
    zero = jnp.float32(0.0)
    row_m = {-1: jnp.where(pos >= W, one, zero),
             0: None,
             1: jnp.where(pos < (H - 1) * W, one, zero)}
    col_m = {-1: jnp.where(col >= 1, one, zero),
             0: None,
             1: jnp.where(col <= W - 2, one, zero)}

    shifts, masks = [], []
    for dy in (-1, 0, 1):
        for dx in (-1, 0, 1):
            shifts.append(dy * W + dx)
            rm, cm = row_m[dy], col_m[dx]
            m = rm if cm is None else (cm if rm is None else rm * cm)
            masks.append(m)                       # None only for the center tap

    for b in range(B):                            # static loop; weights stay resident
        x = x_ref[b]                              # (Cin, HW) f32

        # proj_in: 1x1 conv (BN scale folded into weight rows) + bias + ReLU
        h1 = jnp.dot(w_in_ref[...], x.astype(jnp.bfloat16),
                     preferred_element_type=jnp.float32)
        h1 = jnp.maximum(h1 + b_in_ref[...], 0.0)          # (h, HW) f32

        # main_global: per-image mean over all pixels, kept in f32. The 1x1
        # conv on it is fused into the big matmul below as a 10th tap, so no
        # separate M=1 MXU pass / weight swap is needed.
        gmean = jnp.mean(h1, axis=1, keepdims=True)        # (h, 1) f32

        # main_local: grouped 3x3, stride 1, SAME padding, as one im2col
        # matmul. Shifted views via pltpu.roll on the lane axis, zeroed at the
        # image border with (1, HW) multiplicative masks, cast to bf16 per tap
        # and concatenated along the sublane axis (no lane relayout).
        taps = []
        for s, m in zip(shifts, masks):
            v = h1 if s == 0 else pltpu.roll(h1, shift=(-s) % HW, axis=1)
            if m is not None:
                v = v * m                                   # (1,HW) bcast over sublanes
            taps.append(v.astype(jnp.bfloat16))
        taps.append(jnp.broadcast_to(gmean, (hdim, HW)).astype(jnp.bfloat16))
        patch = jnp.concatenate(taps, axis=0)               # (10h, HW) bf16

        # act(main_local + main_global): single (h, 10h) @ (10h, HW) matmul,
        # both BN biases pre-fused into b_gl.
        mid = jnp.dot(w_lg_ref[...], patch,
                      preferred_element_type=jnp.float32)   # (h, HW) f32
        mid = jnp.maximum(mid + b_gl_ref[...], 0.0)

        # proj_out (scale folded) + bias + identity skip (stride == 1)
        out = jnp.dot(w_out_ref[...], mid.astype(jnp.bfloat16),
                      preferred_element_type=jnp.float32)   # (Cout, HW)
        o_ref[b] = out + b_out_ref[...] + x                 # lane-dense store


# ------------------------------- wrapper -------------------------------------
def _pick_batch_block(n, max_b=8):
    # Largest divisor of n (<= max_b) that still leaves a grid extent >= 2,
    # so both v7x TensorCores stay busy; small n falls back to b = 1.
    best = 1
    for b in range(2, min(n, max_b) + 1):
        if n % b == 0 and n // b >= 2:
            best = b
    return best


def block_forward(x_nchw, p, *, batch_block=None):
    N, Cin, H, W = x_nchw.shape
    HW = H * W
    # Power-of-two W required by the bitwise column mask inside block_kernel.
    assert W > 0 and (W & (W - 1)) == 0, "block_kernel edge masks need power-of-two W"
    Cout = p["w_out"].shape[0]
    hdim = p["w_in"].shape[0]
    kdim = p["w_lg"].shape[1]

    # NCHW -> (N, Cin, H*W): free reshape, no transpose; kernel is channel-major.
    x = x_nchw.reshape(N, Cin, HW).astype(jnp.float32)

    B = batch_block if batch_block is not None else _pick_batch_block(N)
    assert N % B == 0
    G = N // B

    def full(arr):
        return pl.BlockSpec(arr.shape, lambda n, _nd=arr.ndim: (0,) * _nd)

    flops = 2 * N * HW * (hdim * Cin + hdim * kdim + Cout * hdim)
    bytes_accessed = (4 * N * HW * (Cin + Cout)
                      + 2 * (p["w_in"].size + p["w_lg"].size + p["w_out"].size)
                      + 4 * (p["b_in"].size + p["b_gl"].size + p["b_out"].size))

    kernel = functools.partial(block_kernel, H=H, W=W, B=B)
    out = pl.pallas_call(
        kernel,
        out_shape=jax.ShapeDtypeStruct((N, Cout, HW), jnp.float32),
        grid_spec=pltpu.PrefetchScalarGridSpec(
            num_scalar_prefetch=0,
            grid=(G,),      # B images per step; 'parallel' feeds both TCs (v7x)
            in_specs=[
                pl.BlockSpec((B, Cin, HW), lambda n: (n, 0, 0)),
                full(p["w_in"]), full(p["b_in"]),
                full(p["w_lg"]), full(p["b_gl"]),
                full(p["w_out"]), full(p["b_out"]),
            ],
            out_specs=pl.BlockSpec((B, Cout, HW), lambda n: (n, 0, 0)),
        ),
        compiler_params=pltpu.CompilerParams(
            dimension_semantics=("parallel",)),
        cost_estimate=pl.CostEstimate(flops=int(flops), transcendentals=0,
                                      bytes_accessed=int(bytes_accessed)),
    )(x, p["w_in"], p["b_in"], p["w_lg"], p["b_gl"], p["w_out"], p["b_out"])

    return out.reshape(N, Cout, H, W)                       # still NCHW


# -------------------------- deterministic params ------------------------------
def init_params(key, in_dim, h_dim, out_dim, group_width):
    assert out_dim == in_dim, "stride=1 config requires out_dim == in_dim"
    gw = group_width
    assert h_dim % gw == 0

    keys = jax.random.split(key, 8)

    def conv_w(k, shape, fan_in):
        bound = 1.0 / np.sqrt(fan_in)
        return jax.random.uniform(k, shape, jnp.float32, -bound, bound)

    def bn_fold(k, c):
        kg, kb, km, kv = jax.random.split(k, 4)
        gamma = jax.random.uniform(kg, (c,), jnp.float32, 0.5, 1.5)
        beta = 0.1 * jax.random.normal(kb, (c,), jnp.float32)
        mean = 0.1 * jax.random.normal(km, (c,), jnp.float32)
        var = jax.random.uniform(kv, (c,), jnp.float32, 0.5, 1.5)
        scale = gamma / jnp.sqrt(var + 1e-5)
        bias = beta - mean * scale
        return scale, bias, jnp.stack([scale, bias], axis=0)

    # PyTorch-shaped conv weights (OIHW)
    w_in_pt = conv_w(keys[0], (h_dim, in_dim, 1, 1), in_dim)
    w_g_pt = conv_w(keys[1], (h_dim, h_dim, 1, 1), h_dim)
    w_l_pt = conv_w(keys[2], (h_dim, gw, 3, 3), gw * 9)      # grouped 3x3
    w_out_pt = conv_w(keys[3], (out_dim, h_dim, 1, 1), h_dim)

    s_in, b_in, sb_in = bn_fold(keys[4], h_dim)
    s_g, b_g, sb_g = bn_fold(keys[5], h_dim)
    s_l, b_l, sb_l = bn_fold(keys[6], h_dim)
    s_out, b_out, sb_out = bn_fold(keys[7], out_dim)

    # Channel-major (Cout, Cin) matrices with BN scale folded into rows.
    w_in = w_in_pt[:, :, 0, 0] * s_in[:, None]               # (h, Cin)
    w_g = w_g_pt[:, :, 0, 0] * s_g[:, None]                  # (h, h)
    w_out = w_out_pt[:, :, 0, 0] * s_out[:, None]            # (Cout, h)

    # grouped 3x3 -> im2col weight (h, 9h): tap-major columns matching the
    # kernel's (dy, dx) concat order, block-diagonal per tap, scale folded.
    wl_np = np.asarray(w_l_pt)
    w_l = np.zeros((h_dim, 9 * h_dim), np.float32)
    for o in range(h_dim):
        base = (o // gw) * gw
        for j in range(gw):
            for t in range(9):
                w_l[o, t * h_dim + base + j] = wl_np[o, j, t // 3, t % 3]
    w_l = jnp.asarray(w_l) * s_l[:, None]
    # Fuse the global 1x1 conv as a 10th "tap": columns [9h, 10h).
    w_lg = jnp.concatenate([w_l, w_g], axis=1)                # (h, 10h)

    bf16 = lambda a: a.astype(jnp.bfloat16)
    return dict(
        # kernel-shaped weights (bf16 MXU operands) and f32 per-channel biases
        w_in=bf16(w_in), w_lg=bf16(w_lg), w_out=bf16(w_out),
        b_in=b_in.reshape(-1, 1),
        b_gl=(b_g + b_l).reshape(-1, 1),
        b_out=b_out.reshape(-1, 1),
        # PyTorch-shaped f32 copies for the pure-JAX reference
        w_in_pt=w_in_pt, w_g_pt=w_g_pt, w_l_pt=w_l_pt, w_out_pt=w_out_pt,
        sb_in=sb_in, sb_g=sb_g, sb_l=sb_l, sb_out=sb_out,
        groups=h_dim // gw,
    )


# ---------------------------- pure-JAX reference ------------------------------
def reference(x_nchw, p):
    def conv(x, w, groups=1):
        return jax.lax.conv_general_dilated(
            x, w, window_strides=(1, 1), padding="SAME",
            dimension_numbers=("NCHW", "OIHW", "NCHW"),
            feature_group_count=groups)

    def bn(x, sb):
        return x * sb[0][None, :, None, None] + sb[1][None, :, None, None]

    h1 = jax.nn.relu(bn(conv(x_nchw, p["w_in_pt"]), p["sb_in"]))
    g = bn(conv(h1.mean(axis=(2, 3), keepdims=True), p["w_g_pt"]), p["sb_g"])
    loc = bn(conv(h1, p["w_l_pt"], groups=p["groups"]), p["sb_l"])
    mid = jax.nn.relu(g + loc)
    return bn(conv(mid, p["w_out_pt"]), p["sb_out"]) + x_nchw


# --------------------------------- main ---------------------------------------
if __name__ == "__main__":
    N, in_dim, h_dim, out_dim, gw, H, W = 2, 32, 32, 32, 8, 16, 16

    key = jax.random.PRNGKey(0)
    kx, kp = jax.random.split(key)
    x = jax.random.normal(kx, (N, in_dim, H, W), jnp.float32)
    params = init_params(kp, in_dim, h_dim, out_dim, gw)

    out = jax.block_until_ready(block_forward(x, params))
    ref = jax.block_until_ready(reference(x, params))

    assert out.shape == (N, out_dim, H, W)
    # Tolerance accounts for bf16 MXU operands (f32 accumulation) vs f32 ref.
    np.testing.assert_allclose(np.asarray(out), np.asarray(ref),
                               rtol=5e-2, atol=5e-2)
    print("KERNEL_OK")
</pallas_src>

<mosaic_0001>
module attributes {stable_mosaic.version = 11 : i64} {
  func.func @block_kernel(%arg0: i32, %arg1: memref<1x32x256xf32, #tpu.memory_space<vmem>>, %arg2: memref<32x32xbf16, #tpu.memory_space<vmem>>, %arg3: memref<32x1xf32, #tpu.memory_space<vmem>>, %arg4: memref<32x320xbf16, #tpu.memory_space<vmem>>, %arg5: memref<32x1xf32, #tpu.memory_space<vmem>>, %arg6: memref<32x32xbf16, #tpu.memory_space<vmem>>, %arg7: memref<32x1xf32, #tpu.memory_space<vmem>>, %arg8: memref<1x32x256xf32, #tpu.memory_space<vmem>>) attributes {dimension_semantics = [#tpu.dimension_semantics<parallel>], iteration_bounds = array<i64: 2>, scalar_prefetch = 0 : i64, scratch_operands = 0 : i64, tpu.core_type = #tpu.core_type<tc>, window_params = [{transform_indices = @transform_0, window_bounds = array<i64: 1, 32, 256>}, {pipeline_mode = #tpu.pipeline_mode<synchronous>, transform_indices = @transform_1, window_bounds = array<i64: 32, 32>}, {pipeline_mode = #tpu.pipeline_mode<synchronous>, transform_indices = @transform_2, window_bounds = array<i64: 32, 1>}, {pipeline_mode = #tpu.pipeline_mode<synchronous>, transform_indices = @transform_3, window_bounds = array<i64: 32, 320>}, {pipeline_mode = #tpu.pipeline_mode<synchronous>, transform_indices = @transform_4, window_bounds = array<i64: 32, 1>}, {pipeline_mode = #tpu.pipeline_mode<synchronous>, transform_indices = @transform_5, window_bounds = array<i64: 32, 32>}, {pipeline_mode = #tpu.pipeline_mode<synchronous>, transform_indices = @transform_6, window_bounds = array<i64: 32, 1>}, {transform_indices = @transform_7, window_bounds = array<i64: 1, 32, 256>}]} {
    %0 = tpu.iota {dimensions = array<i32: 1>} : vector<1x256xi32>
    %c15_i32 = arith.constant 15 : i32
    %1 = vector.broadcast %c15_i32 : i32 to vector<1x256xi32>
    %2 = arith.andi %0, %1 : vector<1x256xi32>
    %c16_i32 = arith.constant 16 : i32
    %3 = vector.broadcast %c16_i32 : i32 to vector<1x256xi32>
    %4 = arith.cmpi sge, %0, %3 : vector<1x256xi32>
    %cst = arith.constant 1.000000e+00 : f32
    %cst_0 = arith.constant 0.000000e+00 : f32
    %5 = vector.broadcast %cst : f32 to vector<1x256xf32>
    %6 = vector.broadcast %cst_0 : f32 to vector<1x256xf32>
    %7 = arith.select %4, %5, %6 : vector<1x256xi1>, vector<1x256xf32>
    %c240_i32 = arith.constant 240 : i32
    %8 = vector.broadcast %c240_i32 : i32 to vector<1x256xi32>
    %9 = arith.cmpi slt, %0, %8 : vector<1x256xi32>
    %cst_1 = arith.constant 1.000000e+00 : f32
    %cst_2 = arith.constant 0.000000e+00 : f32
    %10 = vector.broadcast %cst_1 : f32 to vector<1x256xf32>
    %11 = vector.broadcast %cst_2 : f32 to vector<1x256xf32>
    %12 = arith.select %9, %10, %11 : vector<1x256xi1>, vector<1x256xf32>
    %c1_i32 = arith.constant 1 : i32
    %13 = vector.broadcast %c1_i32 : i32 to vector<1x256xi32>
    %14 = arith.cmpi sge, %2, %13 : vector<1x256xi32>
    %cst_3 = arith.constant 1.000000e+00 : f32
    %cst_4 = arith.constant 0.000000e+00 : f32
    %15 = vector.broadcast %cst_3 : f32 to vector<1x256xf32>
    %16 = vector.broadcast %cst_4 : f32 to vector<1x256xf32>
    %17 = arith.select %14, %15, %16 : vector<1x256xi1>, vector<1x256xf32>
    %c14_i32 = arith.constant 14 : i32
    %18 = vector.broadcast %c14_i32 : i32 to vector<1x256xi32>
    %19 = arith.cmpi sle, %2, %18 : vector<1x256xi32>
    %cst_5 = arith.constant 1.000000e+00 : f32
    %cst_6 = arith.constant 0.000000e+00 : f32
    %20 = vector.broadcast %cst_5 : f32 to vector<1x256xf32>
    %21 = vector.broadcast %cst_6 : f32 to vector<1x256xf32>
    %22 = arith.select %19, %20, %21 : vector<1x256xi1>, vector<1x256xf32>
    %23 = arith.mulf %7, %17 : vector<1x256xf32>
    %24 = arith.mulf %7, %22 : vector<1x256xf32>
    %25 = arith.mulf %12, %17 : vector<1x256xf32>
    %26 = arith.mulf %12, %22 : vector<1x256xf32>
    %c0 = arith.constant 0 : index
    %c0_7 = arith.constant 0 : index
    %c0_8 = arith.constant 0 : index
    %27 = vector.load %arg1[%c0, %c0_7, %c0_8] : memref<1x32x256xf32, #tpu.memory_space<vmem>>, vector<1x32x256xf32>
    %28 = vector.shape_cast %27 : vector<1x32x256xf32> to vector<32x256xf32>
    %c0_9 = arith.constant 0 : index
    %c0_10 = arith.constant 0 : index
    %29 = vector.load %arg2[%c0_9, %c0_10] : memref<32x32xbf16, #tpu.memory_space<vmem>>, vector<32x32xbf16>
    %30 = arith.truncf %28 : vector<32x256xf32> to vector<32x256xbf16>
    %cst_11 = arith.constant dense<0.000000e+00> : vector<32x256xf32>
    %31 = tpu.matmul %29, %30, %cst_11 {dimension_numbers = #tpu.dot_dimension_numbers<[1], [0], [0], [1], [0, 0, 1, 1], [], []>} : vector<32x32xbf16>, vector<32x256xbf16>, vector<32x256xf32> -> vector<32x256xf32>
    %c0_12 = arith.constant 0 : index
    %c0_13 = arith.constant 0 : index
    %32 = vector.load %arg3[%c0_12, %c0_13] : memref<32x1xf32, #tpu.memory_space<vmem>>, vector<32x1xf32>
    %33 = vector.broadcast %32 : vector<32x1xf32> to vector<32x256xf32>
    %34 = arith.addf %31, %33 : vector<32x256xf32>
    %cst_14 = arith.constant 0.000000e+00 : f32
    %35 = vector.broadcast %cst_14 : f32 to vector<32x256xf32>
    %36 = arith.maximumf %34, %35 : vector<32x256xf32>
    %cst_15 = arith.constant dense<0.000000e+00> : vector<32xf32>
    %37 = vector.multi_reduction <add>, %36, %cst_15 [1] : vector<32x256xf32> to vector<32xf32>
    %38 = vector.shape_cast %37 : vector<32xf32> to vector<32x1xf32>
    %cst_16 = arith.constant 2.560000e+02 : f32
    %39 = vector.broadcast %cst_16 : f32 to vector<32x1xf32>
    %40 = arith.divf %38, %39 : vector<32x1xf32>
    %c17_i32 = arith.constant 17 : i32
    %41 = tpu.dynamic_rotate %36 by %c17_i32 dim 1 : vector<32x256xf32>, i32 -> vector<32x256xf32>
    %42 = vector.broadcast %23 : vector<1x256xf32> to vector<32x256xf32>
    %43 = arith.mulf %41, %42 : vector<32x256xf32>
    %44 = arith.truncf %43 : vector<32x256xf32> to vector<32x256xbf16>
    %c16_i32_17 = arith.constant 16 : i32
    %45 = tpu.dynamic_rotate %36 by %c16_i32_17 dim 1 : vector<32x256xf32>, i32 -> vector<32x256xf32>
    %46 = vector.broadcast %7 : vector<1x256xf32> to vector<32x256xf32>
    %47 = arith.mulf %45, %46 : vector<32x256xf32>
    %48 = arith.truncf %47 : vector<32x256xf32> to vector<32x256xbf16>
    %c15_i32_18 = arith.constant 15 : i32
    %49 = tpu.dynamic_rotate %36 by %c15_i32_18 dim 1 : vector<32x256xf32>, i32 -> vector<32x256xf32>
    %50 = vector.broadcast %24 : vector<1x256xf32> to vector<32x256xf32>
    %51 = arith.mulf %49, %50 : vector<32x256xf32>
    %52 = arith.truncf %51 : vector<32x256xf32> to vector<32x256xbf16>
    %c1_i32_19 = arith.constant 1 : i32
    %53 = tpu.dynamic_rotate %36 by %c1_i32_19 dim 1 : vector<32x256xf32>, i32 -> vector<32x256xf32>
    %54 = vector.broadcast %17 : vector<1x256xf32> to vector<32x256xf32>
    %55 = arith.mulf %53, %54 : vector<32x256xf32>
    %56 = arith.truncf %55 : vector<32x256xf32> to vector<32x256xbf16>
    %57 = arith.truncf %36 : vector<32x256xf32> to vector<32x256xbf16>
    %c255_i32 = arith.constant 255 : i32
    %58 = tpu.dynamic_rotate %36 by %c255_i32 dim 1 : vector<32x256xf32>, i32 -> vector<32x256xf32>
    %59 = vector.broadcast %22 : vector<1x256xf32> to vector<32x256xf32>
    %60 = arith.mulf %58, %59 : vector<32x256xf32>
    %61 = arith.truncf %60 : vector<32x256xf32> to vector<32x256xbf16>
    %c241_i32 = arith.constant 241 : i32
    %62 = tpu.dynamic_rotate %36 by %c241_i32 dim 1 : vector<32x256xf32>, i32 -> vector<32x256xf32>
    %63 = vector.broadcast %25 : vector<1x256xf32> to vector<32x256xf32>
    %64 = arith.mulf %62, %63 : vector<32x256xf32>
    %65 = arith.truncf %64 : vector<32x256xf32> to vector<32x256xbf16>
    %c240_i32_20 = arith.constant 240 : i32
    %66 = tpu.dynamic_rotate %36 by %c240_i32_20 dim 1 : vector<32x256xf32>, i32 -> vector<32x256xf32>
    %67 = vector.broadcast %12 : vector<1x256xf32> to vector<32x256xf32>
    %68 = arith.mulf %66, %67 : vector<32x256xf32>
    %69 = arith.truncf %68 : vector<32x256xf32> to vector<32x256xbf16>
    %c239_i32 = arith.constant 239 : i32
    %70 = tpu.dynamic_rotate %36 by %c239_i32 dim 1 : vector<32x256xf32>, i32 -> vector<32x256xf32>
    %71 = vector.broadcast %26 : vector<1x256xf32> to vector<32x256xf32>
    %72 = arith.mulf %70, %71 : vector<32x256xf32>
    %73 = arith.truncf %72 : vector<32x256xf32> to vector<32x256xbf16>
    %74 = vector.shape_cast %40 : vector<32x1xf32> to vector<32x1xf32>
    %75 = vector.broadcast %74 : vector<32x1xf32> to vector<32x256xf32>
    %76 = arith.truncf %75 : vector<32x256xf32> to vector<32x256xbf16>
    %77 = tpu.concatenate %44, %48, %52, %56, %57, %61, %65, %69, %73, %76 in 0 : vector<32x256xbf16>, vector<32x256xbf16>, vector<32x256xbf16>, vector<32x256xbf16>, vector<32x256xbf16>, vector<32x256xbf16>, vector<32x256xbf16>, vector<32x256xbf16>, vector<32x256xbf16>, vector<32x256xbf16> -> vector<320x256xbf16>
    %c0_21 = arith.constant 0 : index
    %c0_22 = arith.constant 0 : index
    %78 = vector.load %arg4[%c0_21, %c0_22] : memref<32x320xbf16, #tpu.memory_space<vmem>>, vector<32x320xbf16>
    %cst_23 = arith.constant dense<0.000000e+00> : vector<32x256xf32>
    %79 = tpu.matmul %78, %77, %cst_23 {dimension_numbers = #tpu.dot_dimension_numbers<[1], [0], [0], [1], [0, 0, 1, 1], [], []>} : vector<32x320xbf16>, vector<320x256xbf16>, vector<32x256xf32> -> vector<32x256xf32>
    %c0_24 = arith.constant 0 : index
    %c0_25 = arith.constant 0 : index
    %80 = vector.load %arg5[%c0_24, %c0_25] : memref<32x1xf32, #tpu.memory_space<vmem>>, vector<32x1xf32>
    %81 = vector.broadcast %80 : vector<32x1xf32> to vector<32x256xf32>
    %82 = arith.addf %79, %81 : vector<32x256xf32>
    %cst_26 = arith.constant 0.000000e+00 : f32
    %83 = vector.broadcast %cst_26 : f32 to vector<32x256xf32>
    %84 = arith.maximumf %82, %83 : vector<32x256xf32>
    %c0_27 = arith.constant 0 : index
    %c0_28 = arith.constant 0 : index
    %85 = vector.load %arg6[%c0_27, %c0_28] : memref<32x32xbf16, #tpu.memory_space<vmem>>, vector<32x32xbf16>
    %86 = arith.truncf %84 : vector<32x256xf32> to vector<32x256xbf16>
    %cst_29 = arith.constant dense<0.000000e+00> : vector<32x256xf32>
    %87 = tpu.matmul %85, %86, %cst_29 {dimension_numbers = #tpu.dot_dimension_numbers<[1], [0], [0], [1], [0, 0, 1, 1], [], []>} : vector<32x32xbf16>, vector<32x256xbf16>, vector<32x256xf32> -> vector<32x256xf32>
    %c0_30 = arith.constant 0 : index
    %c0_31 = arith.constant 0 : index
    %88 = vector.load %arg7[%c0_30, %c0_31] : memref<32x1xf32, #tpu.memory_space<vmem>>, vector<32x1xf32>
    %89 = vector.broadcast %88 : vector<32x1xf32> to vector<32x256xf32>
    %90 = arith.addf %87, %89 : vector<32x256xf32>
    %91 = arith.addf %90, %28 : vector<32x256xf32>
    %c0_32 = arith.constant 0 : index
    %c0_33 = arith.constant 0 : index
    %c0_34 = arith.constant 0 : index
    %92 = vector.load %arg8[%c0_32, %c0_33, %c0_34] : memref<1x32x256xf32, #tpu.memory_space<vmem>>, vector<1x32x256xf32>
    %93 = vector.shape_cast %92 : vector<1x32x256xf32> to vector<32x256xf32>
    %94 = vector.shape_cast %91 : vector<32x256xf32> to vector<1x32x256xf32>
    tpu.vector_store %arg8[%c0_32, %c0_33, %c0_34], %94 {strides = array<i32>} : memref<1x32x256xf32, #tpu.memory_space<vmem>>, vector<1x32x256xf32>,
    return
  }
  func.func @transform_0(%arg0: i32) -> (i32, i32, i32) {
    %c0_i32 = arith.constant 0 : i32
    %c0_i32_0 = arith.constant 0 : i32
    %c0_i32_1 = arith.constant 0 : i32
    return %arg0, %c0_i32, %c0_i32_0 : i32, i32, i32
  }
  func.func @transform_1(%arg0: i32) -> (i32, i32) {
    %c0_i32 = arith.constant 0 : i32
    %c0_i32_0 = arith.constant 0 : i32
    %c0_i32_1 = arith.constant 0 : i32
    return %c0_i32, %c0_i32_0 : i32, i32
  }
  func.func @transform_2(%arg0: i32) -> (i32, i32) {
    %c0_i32 = arith.constant 0 : i32
    %c0_i32_0 = arith.constant 0 : i32
    %c0_i32_1 = arith.constant 0 : i32
    return %c0_i32, %c0_i32_0 : i32, i32
  }
  func.func @transform_3(%arg0: i32) -> (i32, i32) {
    %c0_i32 = arith.constant 0 : i32
    %c0_i32_0 = arith.constant 0 : i32
    %c0_i32_1 = arith.constant 0 : i32
    return %c0_i32, %c0_i32_0 : i32, i32
  }
  func.func @transform_4(%arg0: i32) -> (i32, i32) {
    %c0_i32 = arith.constant 0 : i32
    %c0_i32_0 = arith.constant 0 : i32
    %c0_i32_1 = arith.constant 0 : i32
    return %c0_i32, %c0_i32_0 : i32, i32
  }
  func.func @transform_5(%arg0: i32) -> (i32, i32) {
    %c0_i32 = arith.constant 0 : i32
    %c0_i32_0 = arith.constant 0 : i32
    %c0_i32_1 = arith.constant 0 : i32
    return %c0_i32, %c0_i32_0 : i32, i32
  }
  func.func @transform_6(%arg0: i32) -> (i32, i32) {
    %c0_i32 = arith.constant 0 : i32
    %c0_i32_0 = arith.constant 0 : i32
    %c0_i32_1 = arith.constant 0 : i32
    return %c0_i32, %c0_i32_0 : i32, i32
  }
  func.func @transform_7(%arg0: i32) -> (i32, i32, i32) {
    %c0_i32 = arith.constant 0 : i32
    %c0_i32_0 = arith.constant 0 : i32
    %c0_i32_1 = arith.constant 0 : i32
    return %arg0, %c0_i32, %c0_i32_0 : i32, i32, i32
  }
}

</mosaic_0001>

<bundles_post_ra>
// kernel: tpu_custom_call.1
= control target key start
LH: loop header
LB: loop body
LE: loop exit
PB: predicated region body
PF: predicated region fallthrough
CT: control target
= control target key end

     0   :  { %12 = vsyncpa [#allocation3], 0  ;;  %s2329_s0 = inlined_call_operand.hbm [shape: f32[2,32,256], index: 0, kind: input, shape index: {}]   ;;  %s2330_s1 = inlined_call_operand.vmem [shape: bf16[32,32], index: 1, kind: input, shape index: {}]   ;;  %s2331_s2 = inlined_call_operand.vmem [shape: f32[32,1], index: 2, kind: input, shape index: {}]   ;;  %s2332_s3 = inlined_call_operand.vmem [shape: bf16[32,320], index: 3, kind: input, shape index: {}]   ;;  %s2333_s4 = inlined_call_operand.vmem [shape: f32[32,1], index: 4, kind: input, shape index: {}]   ;;  %s2334_s5 = inlined_call_operand.vmem [shape: bf16[32,32], index: 5, kind: input, shape index: {}]   ;;  %s2335_s6 = inlined_call_operand.vmem [shape: f32[32,1], index: 6, kind: input, shape index: {}]   ;;  %s2336_s7 = inlined_call_operand.hbm [shape: f32[2,32,256], index: 7, kind: output, shape index: {}]  }
   0x1   :  { %14 = vsyncpa [#allocation3 + $0x1], 0 }
   0x2   :  { %15 = vsyncpa [#allocation4], 0 }
   0x3   :  { %17 = vsyncpa [#allocation4 + $0x1], 0  ;;  %s1413_s24 = smov 0   ;;  %s1415_s25 = smov 0  }
   0x4   :  { %s1417_s26 = smov 0   ;;  %s1419_s27 = smov 0  }
   0x5 LB: > { %s1434_s28 = sadd.s32 4294967295, %s1356_s27   ;;  %s1151_s29 = sadd.s32 4294967294, %s1356_s27   ;;  %s1356_s27 = sphi %s1419_s27, %s2420_s27   ;;  %s1352_s26 = sphi %s1417_s26, %s2419_s26   ;;  %s1348_s25 = sphi %s1415_s25, %s2418_s25   ;;  %s1344_s24 = sphi %s1413_s24, %s2417_s24  }
   0x6   : > { %s1438_s30 = sadd.s32 1, %s1356_s27   ;;  %s30_s8 = sadd.s32 1, %s1352_s26 }
   0x7   : > { %s27_s9 = ssub.s32 %s1356_s27, %s1438_s30  ;;  %p37_p0 = scmp.ne.s32.totalorder %s1352_s26, %s1348_s25 }
   0x8   : > { %p28_p1 = scmp.eq.s32.totalorder %s27_s9, 0  ;;  %p38_p2 = scmp.eq.s32.totalorder %s1356_s27, 0 }
   0x9   : > { %p43_p3 = scmp.ne.s32.totalorder %s1348_s25, %s1344_s24  ;;  %p44_p4 = scmp.eq.s32.totalorder %s1434_s28, 0 }
   0xa   : > { %s1450_s10 = scalar_select %p28_p1, %s1352_s26, %s30_s8  }
   0xb   : > { %p1452_p5 = por %p38_p2, %p37_p0  ;;  %p1456_p6 = por %p44_p4, %p43_p3 }
   0xc   : > { %p193_p7 = scmp.eq.s32.totalorder %s1434_s28, 1  ;;  %p199_p8 = scmp.eq.s32.totalorder %s1151_s29, 1 }
   0xd   : > { %s2359_s12 = scalar_select %p1456_p6, 1, 0 }
   0xe   : > { %p1195_p10 = scmp.lt.s32.totalorder %s1356_s27, 2  ;;  %p1463_p11 = por %p193_p7, %p37_p0 }
   0xf   : > { %p1467_p12 = por %p199_p8, %p43_p3  ;;  %s237_s15 = sand.u32 1, %s1352_s26  }
  0x10   : > { %s2360_s13 = scalar_select %p1463_p11, 1, 0 }
  0x11   : > { %s2361_s14 = scalar_select %p1467_p12, 1, 0 }
  0x12   : > { %s1181_s16 = sshll.u32 %s1356_s27, 10  ;;  %s1154_s17 = sshll.u32 %s237_s15, 6 }
  0x13   : > { %s1476_s20 = scalar_lea.hbm %s2329_s0, %s1181_s16  ;;  %s241_s21 = scalar_lea.vmem [#allocation2], %s1154_s17 }
  0x14   : > { %s248_s22 = sshll.u32 %s241_s21, 4  ;;  %p1480_p13 = pnand %p1195_p10, %p1452_p5  ;;  %s1484_s22 = int_to_ptr.vmem [resolvable:$true] %s248_s22 }
  0x15   : > { %s1486_s29 = scalar_lea.sflag [#allocation3], %s237_s15  ;;  %s1264_s8 = scalar_lea.hbm %s1476_s20, 1024 }
  0x16   : > { %p1265_p0 = scmp.ne.s32.totalorder %s1476_s20, %s1264_s8  ;;  %p1266_p1 = pneg %p1480_p13 }
  0x17   : > { %s1269_s17 = scalar_lea.hbm %s2329_s0, 2048  ;;  %p1270_p4 = scmp.lt.s32.totalorder %s1476_s20, %s2329_s0 }
  0x18   : > { %p1267_p2 = pnand %p1266_p1, %p1265_p0  ;;  %p1271_p5 = scmp.lt.s32.totalorder %s1269_s17, %s1264_s8 }
  0x1a   : > { %p1268_p3 = pneg %p1267_p2  ;;  %p1272_p7 = por %p1271_p5, %p1270_p4 }
  0x1c   : > { %p1273_p8 = pnand %p1272_p7, %p1268_p3 }
  0x1e   : > { %1276 = shalt.err (!%p1273_p8)
}
  0x1f   : > { %s1277_s15 = scalar_lea.vmem %s1484_s22, 1024  ;;  %s1358_s19 = smov [#allocation2]  }
  0x20   : > { %p1278_p10 = scmp.ne.s32.totalorder %s1484_s22, %s1277_s15  ;;  %s1282_s21 = sshll.u32 %s1358_s19, 4  ;;  %s1283_s21 = int_to_ptr.vmem [resolvable:$false] %s1282_s21 }
  0x21   : > { %s1284_s9 = scalar_lea.vmem %s1283_s21, 2048  ;;  %p1285_p2 = scmp.lt.s32.totalorder %s1484_s22, %s1283_s21 }
  0x22   : > { %p1280_p9 = pnand %p1278_p10, %p1266_p1  ;;  %p1286_p12 = scmp.lt.s32.totalorder %s1284_s9, %s1277_s15 }
  0x24   : > { %p1281_p0 = pneg %p1280_p9  ;;  %p1287_p11 = por %p1286_p12, %p1285_p2 }
  0x26   : > { %p1288_p6 = pnand %p1287_p11, %p1281_p0 }
  0x28   : > { %1291 = shalt.err (!%p1288_p6)
}
  0x29   : > { %s1359_s8 = smov 256   ;;  %s1360_s16 = smov 16  }
  0x2a   : > { %1190 = dma.hbm_to_vmem [thread:$0]  (!%p1480_p13), %s1476_s20, 1024, %s1484_s22, %s1486_s29, %s1359_s8, %s1359_s8, %s1360_s16  }
  0x2b   : > { %p1157_p9 = scmp.ge.s32.totalorder %s1356_s27, 1  ;;  %p256_p1 = scmp.lt.s32.totalorder %s1356_s27, 3 }
  0x2d   : > { %p257_p3 = pnand %p1157_p9, %p256_p1 }
  0x2f   : > { %260 = sbr.rel (%p257_p3) target bundleno = 1077 (0x435), region = 48 }
  0x34   : > { %s1510_s17 = sand.u32 1, %s1348_s25   ;;  %p2363_p6 = scmp.ne.s32.totalorder %s2359_s12, 0 }
  0x35   : > { %s1158_s11 = sshll.u32 %s1510_s17, 6  ;;  %s263_s18 = scalar_lea.sflag [#allocation3], %s1510_s17 }
  0x36   : > { %s1516_s15 = scalar_lea.vmem [#allocation2], %s1158_s11 }
  0x37   : > { %1335 = dma.done.wait (%p2363_p6), %s263_s18, 1024  }
  0x38   : > { %1337 = vsyncadd (%p2363_p6), %s263_s18, 4294966272  ;;  %v2339_v0 = vmov 0   ;;  %v332_v1 = vld [vmem:[%s1516_s15 + $0x28] sm:$0xff]  ;;  %v334_v2 = vld [vmem:[%s1516_s15 + $0x38] sm:$0xff]  ;;  %vm377_vm0 = vcmask 261120   ;;  %s1362_s20 = smov 1   ;;  %v298_v54 = vlaneseq }
  0x39   : > { %416 = vmatprep.mubr.bf16.mxu0 %v2339_v0  ;;  %1243 = vset.pattern.permute.xlu1 %v2339_v0  ;;  %v331_v3 = vld [vmem:[%s1516_s15 + $0x20] sm:$0xff]  ;;  %v342_v4 = vpack.c.bf16 %v334_v2, %v332_v1  ;;  %v333_v5 = vld [vmem:[%s1516_s15 + $0x30] sm:$0xff]  ;;  %v328_v6 = vld [vmem:[%s1516_s15 + $0x8] sm:$0xff]  ;;  %s1363_s22 = smov 15   ;;  %s1364_s23 = smov 16   ;;  %vm826_vm15 = vcmask 523264  }
  0x3a   : > { %1242 = vset.pattern.permute.xlu0 %v2339_v0  ;;  %v330_v7 = vld [vmem:[%s1516_s15 + $0x18] sm:$0xff]  ;;  %v341_v8 = vpack.c.bf16 %v333_v5, %v331_v3  ;;  %v327_v10 = vld [vmem:[%s1516_s15] sm:$0xff]  ;;  %v329_v11 = vld [vmem:[%s1516_s15 + $0x10] sm:$0xff]  ;;  %s1365_s29 = smov 17   ;;  %s1366_s19 = smov 112   ;;  %v1677_v57 = vand.u32 127, %v298_v54 }
  0x3b   : > { %v340_v9 = vpack.c.bf16 %v330_v7, %v328_v6  ;;  %396 = vmatprep.subr.bf16.mxu0 %v342_v4  ;;  %v343_v12 = vld [vmem:[%s2331_s2] sm:$0xff]  ;;  %v339_v13 = vpack.c.bf16 %v329_v11, %v327_v10  ;;  %v344_v15 = vld [vmem:[%s2331_s2 + $0x8] sm:$0xff]  ;;  %v345_v16 = vld [vmem:[%s2331_s2 + $0x10] sm:$0xff]  ;;  %s1367_s21 = smov 113   ;;  %s1368_s9 = smov 127   ;;  %v1370_v11 = vmov 0.0  }
  0x3c   : > { %397 = vmatpush1.bf16.msra.mxu0 %v341_v8  ;;  %349 = vperm.xlu1 %1243, %v343_v12   ;;  %v1244_v14 = vld [vmem:[%s2330_s1] sm:$0xff]   ;;  %v346_v17 = vld [vmem:[%s2331_s2 + $0x18] sm:$0xff]  ;;  %v1245_v18 = vld [vmem:[%s2330_s1 + $0x8] sm:$0xff]   ;;  %s1369_s8 = smov 111   ;;  %v1688_v62 = vadd.s32 128, %v1677_v57  ;;  %v301_v4 = vand.u32 15, %v1677_v57 }
  0x3d   : > { %398 = vmatprep.subr.bf16.mxu0 %v340_v9  ;;  %359 = vperm.xlu0 %1242, %v345_v16   ;;  %vm589_vm1 = vcmp.lt.s32.totalorder %v1677_v57, 1  ;;  %vm303_vm2 = vcmp.ge.s32.totalorder %v1677_v57, 16  ;;  %vm552_vm6 = vcmp.lt.s32.totalorder %v1677_v57, 15  ;;  %vm515_vm8 = vcmp.lt.s32.totalorder %v1677_v57, 16  ;;  %p2414_p12 = scmp.ne.s32.totalorder %s2360_s13, 0 }
  0x3e   : > { %v302_v5 = vand.u32 15, %v1688_v62  ;;  %vm315_vm3 = vcmp.le.s32.totalorder %v301_v4, 14  ;;  %vm311_vm4 = vcmp.ge.s32.totalorder %v301_v4, 1  ;;  %v1717_v12 = vsel %vm303_vm2, 1.0, %v1370_v11 }
  0x3f   : > { %vm478_vm9 = vcmp.lt.s32.totalorder %v1677_v57, 17  ;;  %vm704_vm10 = vcmp.lt.s32.totalorder %v1677_v57, 112  ;;  %vm308_vm11 = vcmp.lt.s32.totalorder %v1688_v62, 240  ;;  %vm667_vm12 = vcmp.lt.s32.totalorder %v1677_v57, 113 }
  0x40   : > { %399 = vmatpush1.bf16.msra.mxu0 %v339_v13  ;;  %354 = vperm.xlu1 %1243, %v344_v15   ;;  %vm312_vm5 = vcmp.ge.s32.totalorder %v302_v5, 1  ;;  %v1720_v13 = vsel %vm315_vm3, 1.0, %v1370_v11  ;;  %vm316_vm7 = vcmp.le.s32.totalorder %v302_v5, 14  ;;  %vm630_vm13 = vcmp.lt.s32.totalorder %v1677_v57, 127 }
  0x41   : > { %364 = vperm.xlu0 %1242, %v346_v17   ;;  %v1727_v15 = vsel %vm312_vm5, 1.0, %v1370_v11  ;;  %v1735_v17 = vmul.f32 %v1720_v13, %v1717_v12  ;;  %vm741_vm14 = vcmp.lt.s32.totalorder %v1677_v57, 111  ;;  %v1252_v57 = vld [vmem:[%s2332_s3 + $0x8] ss:$12 sps:$4 sm:$0xff]  }
  0x43   : > { %1162 = vmatmul.mubr.msk.bf16.vlgmr.msra.gmra.mxu0 %vm377_vm0, %v1244_v14  ;;  %v1724_v14 = vsel %vm311_vm4, 1.0, %v1370_v11 }
  0x44   : > { %426 = vmatprep.mubr.bf16.mxu0 %v2339_v0 }
  0x4b   : > { %1163 = vmatmul.mubr.msk.bf16.gmra.mxu0 %vm377_vm0, %v1245_v18 }
  0x4c   : > { %918 = vmatprep.mubr.bf16.mxu0 %v2339_v0 }
  0xb7   : > { %v350_v19 = vpop.permute.xlu1 %349 }
  0xb8   : > { %v360_v37 = vpop.permute.xlu0 %359 }
  0xbb   : > { %v355_v24 = vpop.permute.xlu1 %354 }
  0xbc   : > { %v365_v40 = vpop.permute.xlu0 %364 }
 0x103   : > { %v418_v20 = vpop.f32.mrf.mxu0 }
 0x104   : > { %v419_v21 = vadd.f32 %v418_v20, %v350_v19 }
 0x105   : > { %v420_v22 = vpop.f32.mrf.mxu0 }
 0x106   : > { %v1555_v23 = vmax.f32 %v419_v21, 0.0  ;;  %v421_v29 = vadd.f32 %v420_v22, %v350_v19 }
 0x107   : > { %v422_v25 = vpop.f32.mrf.mxu0 }
 0x108   : > { %2364 = vst [vmem:[#allocation8_spill] sm:$0xff] %v1555_v23  ;;  %v423_v26 = vadd.f32 %v422_v25, %v355_v24  ;;  %573 = vrot.lane.b32.xlu0 %v1555_v23, %s1362_s20  ;;  %v1591_v31 = vmax.f32 %v421_v29, 0.0 }
 0x109   : > { %v424_v30 = vpop.f32.mrf.mxu0 }
 0x10a   : > { %v1559_v27 = vmax.f32 %v423_v26, 0.0  ;;  %2366 = vst [vmem:[#allocation10_spill] sm:$0xff] %v1591_v31  ;;  %v425_v32 = vadd.f32 %v424_v30, %v355_v24  ;;  %v445_v34 = vadd.f32 %v1591_v31, %v1555_v23  ;;  %v1761_v30 = vsel %vm316_vm7, 1.0, %v1370_v11 }
 0x10b   : > { %v428_v36 = vpop.f32.mrf.mxu0 }
 0x10c   : > { %2365 = vst [vmem:[#allocation9_spill] sm:$0xff] %v1559_v27  ;;  %575 = vrot.lane.b32.xlu1 %v1559_v27, %s1362_s20  ;;  %536 = vrot.lane.b32.xlu0 %v1555_v23, %s1363_s22  ;;  %v1597_v33 = vmax.f32 %v425_v32, 0.0  ;;  %v429_v38 = vadd.f32 %v428_v36, %v360_v37 }
 0x10d   : > { %v430_v39 = vpop.f32.mrf.mxu0 }
 0x10e   : > { %2367 = vst [vmem:[#allocation11_spill] sm:$0xff] %v1597_v33  ;;  %v448_v35 = vadd.f32 %v1597_v33, %v1559_v27  ;;  %v1629_v41 = vmax.f32 %v429_v38, 0.0  ;;  %v431_v58 = vadd.f32 %v430_v39, %v360_v37 }
 0x10f   : > { %v432_v42 = vpop.f32.mrf.mxu0 }
 0x110   : > { %538 = vrot.lane.b32.xlu1 %v1559_v27, %s1363_s22  ;;  %499 = vrot.lane.b32.xlu0 %v1555_v23, %s1364_s23  ;;  %2368 = vst [vmem:[#allocation12_spill] sm:$0xff] %v1629_v41  ;;  %v433_v43 = vadd.f32 %v432_v42, %v365_v40  ;;  %v1690_v63 = vmax.f32 %v431_v58, 0.0 }
 0x111   : > { %v434_v59 = vpop.f32.mrf.mxu0 }
 0x112   : > { %v1633_v44 = vmax.f32 %v433_v43, 0.0  ;;  %2370 = vst [vmem:[#allocation14_spill] sm:$0xff] %v1690_v63  ;;  %v435_v1 = vadd.f32 %v434_v59, %v365_v40 }
 0x114   : > { %501 = vrot.lane.b32.xlu1 %v1559_v27, %s1364_s23  ;;  %462 = vrot.lane.b32.xlu0 %v1555_v23, %s1365_s29  ;;  %2369 = vst [vmem:[#allocation13_spill] sm:$0xff] %v1633_v44  ;;  %v1702_v6 = vmax.f32 %v435_v1, 0.0 }
 0x116   : > { %2372 = vst [vmem:[#allocation16_spill] sm:$0xff] %v1702_v6 }
 0x118   : > { %464 = vrot.lane.b32.xlu1 %v1559_v27, %s1365_s29  ;;  %688 = vrot.lane.b32.xlu0 %v1555_v23, %s1366_s19 }
 0x11c   : > { %690 = vrot.lane.b32.xlu1 %v1559_v27, %s1366_s19  ;;  %651 = vrot.lane.b32.xlu0 %v1555_v23, %s1367_s21 }
 0x120   : > { %653 = vrot.lane.b32.xlu1 %v1559_v27, %s1367_s21  ;;  %614 = vrot.lane.b32.xlu0 %v1555_v23, %s1368_s9 }
 0x124   : > { %616 = vrot.lane.b32.xlu1 %v1559_v27, %s1368_s9  ;;  %725 = vrot.lane.b32.xlu0 %v1555_v23, %s1369_s8 }
 0x128   : > { %727 = vrot.lane.b32.xlu1 %v1559_v27, %s1369_s8  ;;  %581 = vrot.lane.b32.xlu0 %v1591_v31, %s1362_s20 }
 0x12c   : > { %583 = vrot.lane.b32.xlu1 %v1597_v33, %s1362_s20  ;;  %544 = vrot.lane.b32.xlu0 %v1591_v31, %s1363_s22 }
 0x130   : > { %546 = vrot.lane.b32.xlu1 %v1597_v33, %s1363_s22  ;;  %507 = vrot.lane.b32.xlu0 %v1591_v31, %s1364_s23 }
 0x134   : > { %509 = vrot.lane.b32.xlu1 %v1597_v33, %s1364_s23  ;;  %470 = vrot.lane.b32.xlu0 %v1591_v31, %s1365_s29 }
 0x138   : > { %472 = vrot.lane.b32.xlu1 %v1597_v33, %s1365_s29  ;;  %696 = vrot.lane.b32.xlu0 %v1591_v31, %s1366_s19 }
 0x13c   : > { %698 = vrot.lane.b32.xlu1 %v1597_v33, %s1366_s19  ;;  %659 = vrot.lane.b32.xlu0 %v1591_v31, %s1367_s21 }
 0x140   : > { %661 = vrot.lane.b32.xlu1 %v1597_v33, %s1367_s21  ;;  %622 = vrot.lane.b32.xlu0 %v1591_v31, %s1368_s9 }
 0x144   : > { %624 = vrot.lane.b32.xlu1 %v1597_v33, %s1368_s9 }
 0x15f   : > { %446 = vadd.xlane.f32.xlu0 %v445_v34 }
 0x168   : > { %449 = vadd.xlane.f32.xlu1 %v448_v35 }
 0x175   : > { %577 = vrot.lane.b32.xlu0 %v1629_v41, %s1362_s20 }
 0x179   : > { %579 = vrot.lane.b32.xlu1 %v1633_v44, %s1362_s20  ;;  %540 = vrot.lane.b32.xlu0 %v1629_v41, %s1363_s22 }
 0x17a   : > { %v574_v45 = vpop.permute.xlu0 %573 }
 0x17d   : > { %542 = vrot.lane.b32.xlu1 %v1633_v44, %s1363_s22  ;;  %503 = vrot.lane.b32.xlu0 %v1629_v41, %s1364_s23 }
 0x17e   : > { %v576_v46 = vpop.permute.xlu1 %575  ;;  %v1643_v47 = vpop.permute.xlu0 %536 }
 0x181   : > { %505 = vrot.lane.b32.xlu1 %v1633_v44, %s1364_s23  ;;  %466 = vrot.lane.b32.xlu0 %v1629_v41, %s1365_s29 }
 0x182   : > { %v1649_v48 = vpop.permute.xlu1 %538  ;;  %v1651_v49 = vpop.permute.xlu0 %499 }
 0x185   : > { %468 = vrot.lane.b32.xlu1 %v1633_v44, %s1365_s29  ;;  %692 = vrot.lane.b32.xlu0 %v1629_v41, %s1366_s19 }
 0x186   : > { %v1657_v50 = vpop.permute.xlu1 %501  ;;  %v1659_v51 = vpop.permute.xlu0 %462 }
 0x189   : > { %694 = vrot.lane.b32.xlu1 %v1633_v44, %s1366_s19  ;;  %655 = vrot.lane.b32.xlu0 %v1629_v41, %s1367_s21 }
 0x18a   : > { %v1665_v52 = vpop.permute.xlu1 %464  ;;  %v1667_v53 = vpop.permute.xlu0 %688 }
 0x18d   : > { %657 = vrot.lane.b32.xlu1 %v1633_v44, %s1367_s21  ;;  %618 = vrot.lane.b32.xlu0 %v1629_v41, %s1368_s9 }
 0x18e   : > { %v1673_v55 = vpop.permute.xlu1 %690  ;;  %v1675_v56 = vpop.permute.xlu0 %651 }
 0x191   : > { %620 = vrot.lane.b32.xlu1 %v1633_v44, %s1368_s9  ;;  %729 = vrot.lane.b32.xlu0 %v1629_v41, %s1369_s8 }
 0x192   : > { %v1683_v60 = vpop.permute.xlu1 %653  ;;  %v1685_v61 = vpop.permute.xlu0 %614 }
 0x195   : > { %731 = vrot.lane.b32.xlu1 %v1633_v44, %s1369_s8  ;;  %585 = vrot.lane.b32.xlu0 %v1690_v63, %s1362_s20 }
 0x196   : > { %v1696_v2 = vpop.permute.xlu1 %616  ;;  %v1698_v3 = vpop.permute.xlu0 %725 }
 0x197   : > { %2371 = vst [vmem:[#allocation15_spill] sm:$0xff] %v1698_v3 }
 0x199   : > { %587 = vrot.lane.b32.xlu1 %v1702_v6, %s1362_s20  ;;  %548 = vrot.lane.b32.xlu0 %v1690_v63, %s1363_s22  ;;  %s1182_s20 = sshll.u32 %s1434_s28, 10 }
 0x19a   : > { %v1710_v7 = vpop.permute.xlu1 %727  ;;  %v582_v8 = vpop.permute.xlu0 %581 }
 0x19b   : > { %2373 = vst [vmem:[#allocation17_spill] sm:$0xff] %v1710_v7  ;;  %v590_v9 = vsel %vm589_vm1, %v574_v45, %v582_v8  ;;  %v594_v10 = vsel %vm589_vm1, %v582_v8, %v574_v45 }
 0x19c   : > { %v1749_v24 = vmul.f32 %v594_v10, %v1724_v14  ;;  %v1752_v25 = vmul.f32 %v590_v9, %v1727_v15 }
 0x19d   : > { %550 = vrot.lane.b32.xlu1 %v1702_v6, %s1363_s22  ;;  %511 = vrot.lane.b32.xlu0 %v1690_v63, %s1364_s23 }
 0x19e   : > { %v584_v16 = vpop.permute.xlu1 %583  ;;  %v545_v18 = vpop.permute.xlu0 %544 }
 0x19f   : > { %v591_v19 = vsel %vm589_vm1, %v576_v46, %v584_v16  ;;  %v595_v20 = vsel %vm589_vm1, %v584_v16, %v576_v46  ;;  %v553_v21 = vsel %vm552_vm6, %v1643_v47, %v545_v18  ;;  %v557_v22 = vsel %vm552_vm6, %v545_v18, %v1643_v47  ;;  %v956_v16 = vld [vmem:[%s2335_s6 + $0x8] sm:$0xff] }
 0x1a0   : > { %v1755_v26 = vmul.f32 %v595_v20, %v1724_v14  ;;  %v1758_v29 = vmul.f32 %v591_v19, %v1727_v15  ;;  %v1787_v42 = vmul.f32 %v557_v22, %v1735_v17  ;;  %v1790_v43 = vmul.f32 %v553_v21, %v1761_v30 }
 0x1a1   : > { %513 = vrot.lane.b32.xlu1 %v1702_v6, %s1364_s23  ;;  %474 = vrot.lane.b32.xlu0 %v1690_v63, %s1365_s29 }
 0x1a2   : > { %v547_v32 = vpop.permute.xlu1 %546  ;;  %v508_v34 = vpop.permute.xlu0 %507 }
 0x1a3   : > { %v554_v37 = vsel %vm552_vm6, %v1649_v48, %v547_v32  ;;  %v558_v38 = vsel %vm552_vm6, %v547_v32, %v1649_v48  ;;  %v1781_v39 = vsel %vm515_vm8, %v1651_v49, %v508_v34  ;;  %v520_v40 = vsel %vm515_vm8, %v508_v34, %v1651_v49 }
 0x1a4   : > { %v1793_v45 = vmul.f32 %v558_v38, %v1735_v17  ;;  %v1796_v46 = vmul.f32 %v554_v37, %v1761_v30  ;;  %v1804_v48 = vmul.f32 %v1724_v14, %v1717_v12  ;;  %v1825_v8 = vmul.f32 %v520_v40, %v1717_v12 }
 0x1a5   : > { %476 = vrot.lane.b32.xlu1 %v1702_v6, %s1365_s29  ;;  %700 = vrot.lane.b32.xlu0 %v1690_v63, %s1366_s19  ;;  %v1868_v34 = vsel %vm308_vm11, 1.0, %v1370_v11 }
 0x1a6   : > { %v510_v47 = vpop.permute.xlu1 %509  ;;  %v471_v49 = vpop.permute.xlu0 %470  ;;  %v1876_v37 = vmul.f32 %v1727_v15, %v1868_v34 }
 0x1a7   : > { %v1813_v59 = vsel %vm515_vm8, %v1657_v50, %v510_v47  ;;  %v521_v1 = vsel %vm515_vm8, %v510_v47, %v1657_v50  ;;  %v479_v4 = vsel %vm478_vm9, %v1659_v51, %v471_v49  ;;  %v483_v5 = vsel %vm478_vm9, %v471_v49, %v1659_v51 }
 0x1a8   : > { %v1828_v9 = vmul.f32 %v521_v1, %v1717_v12  ;;  %v1856_v21 = vmul.f32 %v483_v5, %v1804_v48  ;;  %v1859_v22 = vmul.f32 %v479_v4, %v1727_v15 }
 0x1a9   : > { %702 = vrot.lane.b32.xlu1 %v1702_v6, %s1366_s19  ;;  %663 = vrot.lane.b32.xlu0 %v1690_v63, %s1367_s21  ;;  %s2284_s19 = scalar_lea.hbm %s2336_s7, %s1182_s20 }
 0x1aa   : > { %v473_v50 = vpop.permute.xlu1 %472  ;;  %v697_v51 = vpop.permute.xlu0 %696 }
 0x1ab   : > { %v480_v18 = vsel %vm478_vm9, %v1665_v52, %v473_v50  ;;  %v484_v19 = vsel %vm478_vm9, %v473_v50, %v1665_v52  ;;  %v1850_v20 = vsel %vm704_vm10, %v1667_v53, %v697_v51  ;;  %v709_v62 = vsel %vm704_vm10, %v697_v51, %v1667_v53 }
 0x1ac   : > { %v1862_v32 = vmul.f32 %v484_v19, %v1804_v48  ;;  %v1865_v52 = vmul.f32 %v480_v18, %v1727_v15  ;;  %v1897_v5 = vmul.f32 %v709_v62, %v1868_v34 }
 0x1ad   : > { %665 = vrot.lane.b32.xlu1 %v1702_v6, %s1367_s21  ;;  %626 = vrot.lane.b32.xlu0 %v1690_v63, %s1368_s9  ;;  %s1065_s21 = scalar_lea.sflag [#allocation4], %s1510_s17 }
 0x1ae   : > { %v699_v53 = vpop.permute.xlu1 %698  ;;  %v660_v38 = vpop.permute.xlu0 %659 }
 0x1af   : > { %v1885_v11 = vsel %vm704_vm10, %v1673_v55, %v699_v53  ;;  %v710_v49 = vsel %vm704_vm10, %v699_v53, %v1673_v55  ;;  %v668_v1 = vsel %vm667_vm12, %v1675_v56, %v660_v38  ;;  %v672_v4 = vsel %vm667_vm12, %v660_v38, %v1675_v56  ;;  %v955_v56 = vld [vmem:[%s2335_s6] sm:$0xff] }
 0x1b0   : > { %v1900_v50 = vmul.f32 %v710_v49, %v1868_v34  ;;  %v1924_v49 = vmul.f32 %v668_v1, %v1724_v14  ;;  %v1927_v0 = vmul.f32 %v672_v4, %v1876_v37 }
 0x1b1   : > { %628 = vrot.lane.b32.xlu1 %v1702_v6, %s1368_s9  ;;  %737 = vrot.lane.b32.xlu0 %v1690_v63, %s1369_s8  ;;  %s1371_s9 = smov [#allocation5]  }
 0x1b2   : > { %v662_v55 = vpop.permute.xlu1 %661  ;;  %v623_v18 = vpop.permute.xlu0 %622  ;;  %2374 = vst [vmem:[#allocation18_spill] sm:$0xff] %v1924_v49  ;;  %s1296_s16 = sshll.u32 %s1371_s9, 4  ;;  %s1297_s16 = int_to_ptr.vmem [resolvable:$false] %s1296_s16 }
 0x1b3   : > { %v669_v19 = vsel %vm667_vm12, %v1683_v60, %v662_v55  ;;  %v673_v62 = vsel %vm667_vm12, %v662_v55, %v1683_v60  ;;  %v631_v53 = vsel %vm630_vm13, %v1685_v61, %v623_v18  ;;  %v635_v38 = vsel %vm630_vm13, %v623_v18, %v1685_v61  ;;  %s1298_s18 = scalar_lea.vmem %s1297_s16, 2048 }
 0x1b4   : > { %v1930_v28 = vmul.f32 %v669_v19, %v1724_v14  ;;  %v1933_v51 = vmul.f32 %v673_v62, %v1876_v37  ;;  %v1948_v18 = vmul.f32 %v631_v53, %v1720_v13  ;;  %v1951_v19 = vmul.f32 %v635_v38, %v1761_v30  ;;  %v1248_v38 = vld [vmem:[%s2332_s3 + $0x4] ss:$12 sps:$4 sm:$0xff]  }
 0x1b5   : > { %739 = vrot.lane.b32.xlu1 %v1702_v6, %s1369_s8  ;;  %v454_v53 = vadd.f32 %v1702_v6, %v1633_v44  ;;  %865 = vmatprep.mubr.bf16.mxu1 %v1248_v38  ;;  %v773_v38 = vld [vmem:[%s2333_s4 + $0x8] sm:$0xff] }
 0x1b6   : > { %2375 = vst [vmem:[#allocation19_spill] sm:$0xff] %v1930_v28  ;;  %v625_v60 = vpop.permute.xlu1 %624  ;;  %2376 = vst [vmem:[#allocation20_spill] sm:$0xff] %v1948_v18 }
 0x1b7   : > { %v632_v1 = vsel %vm630_vm13, %v1696_v2, %v625_v60  ;;  %v636_v4 = vsel %vm630_vm13, %v625_v60, %v1696_v2  ;;  %2377 = vst [vmem:[#allocation21_spill] sm:$0xff] %v1951_v19  ;;  %v451_v2 = vadd.f32 %v1690_v63, %v1629_v41  ;;  %v774_v60 = vld [vmem:[%s2333_s4 + $0x10] sm:$0xff] }
 0x1b8   : > { %v1954_v62 = vmul.f32 %v632_v1, %v1720_v13  ;;  %v1957_v55 = vmul.f32 %v636_v4, %v1761_v30  ;;  %v775_v4 = vld [vmem:[%s2333_s4 + $0x18] sm:$0xff] }
 0x1ba   : > { %2378 = vst [vmem:[#allocation22_spill] sm:$0xff] %v1954_v62  ;;  %2379 = vst [vmem:[#allocation23_spill] sm:$0xff] %v1957_v55 }
 0x1d0   : > { %452 = vadd.xlane.f32.xlu0 %v451_v2  ;;  %v772_v2 = vld [vmem:[%s2333_s4] sm:$0xff] }
 0x1d9   : > { %455 = vadd.xlane.f32.xlu1 %v454_v53 }
 0x1e6   : > { %733 = vrot.lane.b32.xlu0 %v1591_v31, %s1369_s8 }
 0x1e8   : > { %v447_v1 = vpop.xlane.xlu0 %446 }
 0x1e9   : > { %v458_v47 = vmul.f32 0.00390625, %v447_v1 }
 0x1ea   : > { %735 = vrot.lane.b32.xlu1 %v1597_v33, %s1369_s8  ;;  %788 = vperm.xlu0 %1242, %v774_v60   ;;  %s2261_s8 = scalar_lea.vmem [#allocation5], %s1158_s11 }
 0x1eb   : > { %s1078_s11 = sshll.u32 %s2261_s8, 4  ;;  %s2277_s11 = int_to_ptr.vmem [resolvable:$true] %s1078_s11 }
 0x1ec   : > { %v578_v53 = vpop.permute.xlu0 %577  ;;  %s1292_s28 = scalar_lea.vmem %s2277_s11, 1024  ;;  %p1299_p5 = scmp.lt.s32.totalorder %s2277_s11, %s1297_s16 }
 0x1ed   : > { %p1293_p11 = scmp.ne.s32.totalorder %s2277_s11, %s1292_s28  ;;  %p1300_p7 = scmp.lt.s32.totalorder %s1298_s18, %s1292_s28 }
 0x1ee   : > { %793 = vperm.xlu1 %1243, %v775_v4   ;;  %778 = vperm.xlu0 %1242, %v772_v2   ;;  %v957_v4 = vld [vmem:[%s2335_s6 + $0x10] sm:$0xff] }
 0x1ef   : > { %p1294_p13 = pnand %p1293_p11, %p2414_p12  ;;  %p1301_p8 = por %p1300_p7, %p1299_p5 }
 0x1f0   : > { %v541_v60 = vpop.permute.xlu0 %540 }
 0x1f1   : > { %v450_v61 = vpop.xlane.xlu1 %449  ;;  %p1295_p4 = pneg %p1294_p13 }
 0x1f2   : > { %v459_v40 = vmul.f32 0.00390625, %v450_v61  ;;  %783 = vperm.xlu1 %1243, %v773_v38   ;;  %961 = vperm.xlu0 %1242, %v955_v56   ;;  %v958_v61 = vld [vmem:[%s2335_s6 + $0x18] sm:$0xff] }
 0x1f3   : > { %p1302_p10 = pnand %p1301_p8, %p1295_p4 }
 0x1f4   : > { %v1995_v2 = vpack.c.bf16 %v459_v40, %v458_v47  ;;  %v504_v10 = vpop.permute.xlu0 %503 }
 0x1f5   : > { %v580_v58 = vpop.permute.xlu1 %579 }
 0x1f6   : > { %2380 = vst [vmem:[#allocation24_spill] sm:$0xff] %v1995_v2  ;;  %966 = vperm.xlu1 %1243, %v956_v16   ;;  %971 = vperm.xlu0 %1242, %v957_v4  }
 0x1f8   : > { %v2000_v1 = vpop.permute.xlu0 %466 }
 0x1f9   : > { %v543_v56 = vpop.permute.xlu1 %542 }
 0x1fa   : > { %976 = vperm.xlu1 %1243, %v958_v61  }
 0x1fc   : > { %v2002_v38 = vpop.permute.xlu0 %692 }
 0x1fd   : > { %v506_v54 = vpop.permute.xlu1 %505 }
 0x200   : > { %v2004_v36 = vpop.permute.xlu0 %655 }
 0x201   : > { %v469_v35 = vpop.permute.xlu1 %468 }
 0x204   : > { %v2006_v40 = vpop.permute.xlu0 %618 }
 0x205   : > { %v2008_v47 = vpop.permute.xlu1 %694 }
 0x208   : > { %v2010_v16 = vpop.permute.xlu0 %729 }
 0x209   : > { %v2012_v4 = vpop.permute.xlu1 %657 }
 0x20c   : > { %v586_v3 = vpop.permute.xlu0 %585 }
 0x20d   : > { %v2014_v2 = vpop.permute.xlu1 %620  ;;  %v592_v61 = vsel %vm589_vm1, %v578_v53, %v586_v3  ;;  %v596_v27 = vsel %vm589_vm1, %v586_v3, %v578_v53 }
 0x20e   : > { %v602_v18 = vmul.f32 %v596_v27, %v1724_v14  ;;  %v603_v6 = vmul.f32 %v592_v61, %v1727_v15 }
 0x210   : > { %v549_v7 = vpop.permute.xlu0 %548 }
 0x211   : > { %v2016_v23 = vpop.permute.xlu1 %731  ;;  %v555_v53 = vsel %vm552_vm6, %v541_v60, %v549_v7 }
 0x214   : > { %v512_v33 = vpop.permute.xlu0 %511 }
 0x215   : > { %v588_v31 = vpop.permute.xlu1 %587 }
 0x216   : > { %v593_v44 = vsel %vm589_vm1, %v580_v58, %v588_v31  ;;  %v597_v41 = vsel %vm589_vm1, %v588_v31, %v580_v58  ;;  %v2381_v58 = vpack.c.bf16 %v1758_v29, %v1752_v25  ;;  %v522_v29 = vsel %vm515_vm8, %v512_v33, %v504_v10 }
 0x217   : > { %v604_v62 = vmul.f32 %v597_v41, %v1724_v14  ;;  %v605_v63 = vmul.f32 %v593_v44, %v1727_v15  ;;  %v559_v44 = vsel %vm552_vm6, %v549_v7, %v541_v60 }
 0x218   : > { %v475_v19 = vpop.permute.xlu0 %474 }
 0x219   : > { %v551_v55 = vpop.permute.xlu1 %550  ;;  %v609_v49 = vpack.c.bf16 %v605_v63, %v603_v6  ;;  %v608_v3 = vpack.c.bf16 %v604_v62, %v602_v18  ;;  %v566_v63 = vmul.f32 %v555_v53, %v1761_v30 }
 0x21a   : > { %v556_v28 = vsel %vm552_vm6, %v543_v56, %v551_v55  ;;  %v560_v31 = vsel %vm552_vm6, %v551_v55, %v543_v56  ;;  %v565_v55 = vmul.f32 %v559_v44, %v1735_v17 }
 0x21b   : > { %v568_v27 = vmul.f32 %v556_v28, %v1761_v30  ;;  %833 = vmatprep.subr.bf16.mxu1 %v609_v49  ;;  %v567_v18 = vmul.f32 %v560_v31, %v1735_v17  ;;  %v2382_v28 = vpack.c.bf16 %v1755_v26, %v1749_v24  ;;  %v2383_v24 = vpack.c.bf16 %v1796_v46, %v1790_v43 }
 0x21c   : > { %834 = vmatpush1.bf16.msra.mxu1 %v608_v3  ;;  %v2037_v41 = vpop.permute.xlu0 %700  ;;  %v518_v26 = vsel %vm515_vm8, %v504_v10, %v512_v33  ;;  %v528_v31 = vmul.f32 %v522_v29, %v1717_v12  ;;  %v481_v33 = vsel %vm478_vm9, %v2000_v1, %v475_v19 }
 0x21d   : > { %v514_v6 = vpop.permute.xlu1 %513  ;;  %835 = vmatprep.subr.bf16.mxu1 %v2381_v58  ;;  %v572_v62 = vpack.c.bf16 %v568_v27, %v566_v63  ;;  %v571_v7 = vpack.c.bf16 %v567_v18, %v565_v55  ;;  %v2384_v27 = vpack.c.bf16 %v1793_v45, %v1787_v42  ;;  %v492_v42 = vmul.f32 %v481_v33, %v1727_v15 }
 0x21e   : > { %v523_v60 = vsel %vm515_vm8, %v514_v6, %v506_v54  ;;  %v519_v25 = vsel %vm515_vm8, %v506_v54, %v514_v6  ;;  %v2385_v6 = vpack.c.bf16 %v1813_v59, %v1781_v39  ;;  %v2092_v18 = vmul.f32 %v1761_v30, %v1868_v34 }
 0x21f   : > { %v530_v61 = vmul.f32 %v523_v60, %v1717_v12  ;;  %v535_v3 = vpack.c.bf16 %v519_v25, %v518_v26  ;;  %v485_v12 = vsel %vm478_vm9, %v475_v19, %v2000_v1  ;;  %v2386_v59 = vpack.c.bf16 %v1828_v9, %v1825_v8 }
 0x220   : > { %836 = vmatpush1.bf16.msra.mxu1 %v2382_v28  ;;  %v2050_v49 = vpop.permute.xlu0 %663 }
 0x221   : > { %v477_v56 = vpop.permute.xlu1 %476  ;;  %837 = vmatprep.subr.bf16.mxu1 %v572_v62  ;;  %v534_v43 = vpack.c.bf16 %v530_v61, %v528_v31  ;;  %v711_v62 = vsel %vm704_vm10, %v2037_v41, %v2002_v38 }
 0x222   : > { %v482_v54 = vsel %vm478_vm9, %v469_v35, %v477_v56  ;;  %v486_v46 = vsel %vm478_vm9, %v477_v56, %v469_v35  ;;  %v718_v25 = vmul.f32 %v711_v62, %v1868_v34  ;;  %v2407_v62 = vld [vmem:[#allocation9_spill] sm:$0xff] }
 0x223   : > { %v494_v10 = vmul.f32 %v482_v54, %v1727_v15  ;;  %v493_v58 = vmul.f32 %v486_v46, %v1804_v48  ;;  %v491_v15 = vmul.f32 %v485_v12, %v1804_v48  ;;  %v2393_v46 = vld [vmem:[#allocation18_spill] sm:$0xff] }
 0x224   : > { %838 = vmatpush1.bf16.msra.mxu1 %v571_v7  ;;  %v2064_v53 = vpop.permute.xlu0 %626 }
 0x225   : > { %v703_v17 = vpop.permute.xlu1 %702  ;;  %839 = vmatprep.subr.bf16.mxu1 %v2383_v24  ;;  %v498_v19 = vpack.c.bf16 %v494_v10, %v492_v42  ;;  %v497_v56 = vpack.c.bf16 %v493_v58, %v491_v15  ;;  %v2395_v42 = vld [vmem:[#allocation23_spill] sm:$0xff]  ;;  %v2403_v58 = vld [vmem:[#allocation12_spill] sm:$0xff]  ;;  %v2405_v15 = vld [vmem:[#allocation10_spill] sm:$0xff] }
 0x226   : > { %v712_v35 = vsel %vm704_vm10, %v703_v17, %v2008_v47  ;;  %v708_v26 = vsel %vm704_vm10, %v2008_v47, %v703_v17 }
 0x227   : > { %v720_v48 = vmul.f32 %v712_v35, %v1868_v34  ;;  %v2388_v34 = vpack.c.bf16 %v1862_v32, %v1856_v21  ;;  %v670_v21 = vsel %vm667_vm12, %v2004_v36, %v2050_v49  ;;  %v2404_v35 = vld [vmem:[#allocation13_spill] sm:$0xff] }
 0x228   : > { %840 = vmatpush1.bf16.msra.mxu1 %v2384_v27  ;;  %v738_v45 = vpop.permute.xlu0 %737  ;;  %v680_v27 = vmul.f32 %v670_v21, %v1724_v14 }
 0x229   : > { %v666_v44 = vpop.permute.xlu1 %665  ;;  %841 = vmatprep.subr.bf16.mxu1 %v535_v3  ;;  %v744_v1 = vsel %vm741_vm14, %v2010_v16, %v738_v45  ;;  %v748_v39 = vsel %vm741_vm14, %v738_v45, %v2010_v16  ;;  %v724_v61 = vpack.c.bf16 %v720_v48, %v718_v25  ;;  %v2399_v45 = vld [vmem:[#allocation16_spill] sm:$0xff] }
 0x22a   : > { %v2116_v8 = vmul.f32 %v744_v1, %v1720_v13  ;;  %v2119_v9 = vmul.f32 %v748_v39, %v2092_v18  ;;  %v675_v3 = vsel %vm667_vm12, %v666_v44, %v2012_v4  ;;  %v671_v17 = vsel %vm667_vm12, %v2012_v4, %v666_v44  ;;  %v2406_v1 = vld [vmem:[#allocation11_spill] sm:$0xff] }
 0x22b   : > { %v683_v31 = vmul.f32 %v675_v3, %v1876_v37  ;;  %v2390_v44 = vpack.c.bf16 %v1885_v11, %v1850_v20  ;;  %v633_v20 = vsel %vm630_vm13, %v2006_v40, %v2064_v53  ;;  %v611_v39 = vpack.c.bf16 %v2406_v1, %v2405_v15 }
 0x22c   : > { %842 = vmatpush1.bf16.msra.mxu1 %v534_v43  ;;  %v643_v43 = vmul.f32 %v633_v20, %v1720_v13 }
 0x22d   : > { %v629_v63 = vpop.permute.xlu1 %628  ;;  %843 = vmatprep.subr.bf16.mxu1 %v2385_v6 }
 0x22e   : > { %v638_v4 = vsel %vm630_vm13, %v629_v63, %v2014_v2 }
 0x230   : > { %844 = vmatpush1.bf16.msra.mxu1 %v2386_v59  ;;  %v1246_v59 = vld [vmem:[%s2332_s3] ss:$12 sps:$4 sm:$0xff]  }
 0x231   : > { %v740_v55 = vpop.permute.xlu1 %739  ;;  %845 = vmatprep.subr.bf16.mxu1 %v498_v19  ;;  %v612_v19 = vpack.c.bf16 %v2404_v35, %v2403_v58 }
 0x232   : > { %v745_v28 = vsel %vm741_vm14, %v2016_v23, %v740_v55  ;;  %v749_v16 = vsel %vm741_vm14, %v740_v55, %v2016_v23  ;;  %v2387_v23 = vpack.c.bf16 %v1865_v52, %v1859_v22  ;;  %v707_v22 = vsel %vm704_vm10, %v2002_v38, %v2037_v41  ;;  %v2408_v55 = vld [vmem:[#allocation8_spill] sm:$0xff] }
 0x233   : > { %v2122_v7 = vmul.f32 %v745_v28, %v1720_v13  ;;  %v2125_v60 = vmul.f32 %v749_v16, %v2092_v18  ;;  %v674_v52 = vsel %vm667_vm12, %v2050_v49, %v2004_v36  ;;  %v723_v47 = vpack.c.bf16 %v708_v26, %v707_v22  ;;  %v1249_v28 = vld [vmem:[%s2332_s3 + $0x1c] ss:$12 sps:$4 sm:$0xff]   ;;  %v1251_v16 = vld [vmem:[%s2332_s3 + $0x18] ss:$12 sps:$4 sm:$0xff]  }
 0x234   : > { %846 = vmatpush1.bf16.msra.mxu1 %v497_v56  ;;  %v681_v32 = vmul.f32 %v674_v52, %v1876_v37  ;;  %v2389_v38 = vpack.c.bf16 %v1900_v50, %v1897_v5  ;;  %v682_v41 = vmul.f32 %v671_v17, %v1724_v14  ;;  %v637_v36 = vsel %vm630_vm13, %v2064_v53, %v2006_v40  ;;  %v2396_v40 = vld [vmem:[#allocation21_spill] sm:$0xff]  ;;  %v2412_v17 = vld [vmem:[#allocation15_spill] sm:$0xff] }
 0x235   : > { %v760_v29 = vpack.c.bf16 %v2122_v7, %v2116_v8  ;;  %847 = vmatprep.subr.bf16.mxu1 %v2387_v23  ;;  %v761_v24 = vpack.c.bf16 %v2125_v60, %v2119_v9  ;;  %v634_v5 = vsel %vm630_vm13, %v2014_v2, %v629_v63  ;;  %v646_v14 = vmul.f32 %v638_v4, %v1761_v30  ;;  %v2392_v2 = vld [vmem:[#allocation19_spill] sm:$0xff]  ;;  %v2401_v63 = vld [vmem:[#allocation20_spill] sm:$0xff]  ;;  %v2410_v22 = vld [vmem:[#allocation17_spill] sm:$0xff] }
 0x236   : > { %v687_v54 = vpack.c.bf16 %v683_v31, %v681_v32  ;;  %v686_v37 = vpack.c.bf16 %v682_v41, %v680_v27  ;;  %v644_v11 = vmul.f32 %v637_v36, %v1761_v30  ;;  %v2391_v50 = vpack.c.bf16 %v1933_v51, %v1927_v0  ;;  %v2398_v30 = vld [vmem:[#allocation14_spill] sm:$0xff]  ;;  %v1253_v9 = vld [vmem:[%s2332_s3 + $0x20] ss:$12 sps:$4 sm:$0xff]  }
 0x237   : > { %v645_v49 = vmul.f32 %v634_v5, %v1720_v13  ;;  %v2394_v10 = vpack.c.bf16 %v2392_v2, %v2393_v46  ;;  %v2397_v53 = vpack.c.bf16 %v2395_v42, %v2396_v40  ;;  %v613_v0 = vpack.c.bf16 %v2399_v45, %v2398_v30  ;;  %v2400_v51 = vld [vmem:[#allocation22_spill] sm:$0xff] }
 0x238   : > { %848 = vmatpush1.bf16.msra.mxu1 %v2388_v34  ;;  %v650_v33 = vpack.c.bf16 %v646_v14, %v644_v11  ;;  %v2402_v6 = vpack.c.bf16 %v2400_v51, %v2401_v63  ;;  %v2409_v48 = vpack.c.bf16 %v2407_v62, %v2408_v55 }
 0x239   : > { %849 = vmatprep.subr.bf16.mxu1 %v724_v61  ;;  %v649_v12 = vpack.c.bf16 %v645_v49, %v643_v43 }
 0x23c   : > { %850 = vmatpush2.bf16.msra.mxu1 %v723_v47  ;;  %v2411_v47 = vld [vmem:[#allocation24_spill] sm:$0xff] }
 0x23d   : > { %851 = vmatprep.subr.bf16.mxu1 %v2389_v38 }
 0x240   : > { %852 = vmatpush2.bf16.msra.mxu1 %v2390_v44 }
 0x241   : > { %853 = vmatprep.subr.bf16.mxu1 %v687_v54 }
 0x244   : > { %854 = vmatpush2.bf16.msra.mxu1 %v686_v37 }
 0x245   : > { %855 = vmatprep.subr.bf16.mxu1 %v2391_v50 }
 0x248   : > { %856 = vmatpush2.bf16.msra.mxu1 %v2394_v10 }
 0x249   : > { %857 = vmatprep.subr.bf16.mxu1 %v650_v33 }
 0x24c   : > { %858 = vmatpush2.bf16.msra.mxu1 %v649_v12 }
 0x24d   : > { %859 = vmatprep.subr.bf16.mxu1 %v2397_v53 }
 0x250   : > { %860 = vmatpush2.bf16.msra.mxu1 %v2402_v6 }
 0x251   : > { %861 = vmatprep.subr.bf16.mxu1 %v613_v0 }
 0x254   : > { %862 = vmatpush2.bf16.msra.mxu1 %v612_v19 }
 0x255   : > { %863 = vmatprep.subr.bf16.mxu1 %v611_v39 }
 0x258   : > { %864 = vmatpush2.bf16.msra.mxu1 %v2409_v48 }
 0x259   : > { %v453_v56 = vpop.xlane.xlu0 %452 }
 0x25a   : > { %v460_v23 = vmul.f32 0.00390625, %v453_v56 }
 0x25b   : > { %866 = vmatmul.mubr.bf16.vlgmr.msra.gmra.mxu1 %v1246_v59 }
 0x25c   : > { %875 = vmatprep.mubr.bf16.mxu1 %v1249_v28 }
 0x25d   : > { %v734_v34 = vpop.permute.xlu0 %733 }
 0x25e   : > { %v746_v31 = vsel %vm741_vm14, %v734_v34, %v2412_v17  ;;  %v742_v38 = vsel %vm741_vm14, %v2412_v17, %v734_v34 }
 0x25f   : > { %v751_v41 = vmul.f32 %v746_v31, %v2092_v18  ;;  %v750_v4 = vmul.f32 %v742_v38, %v1720_v13 }
 0x262   : > { %v456_v25 = vpop.xlane.xlu1 %455 }
 0x263   : > { %v461_v26 = vmul.f32 0.00390625, %v456_v25  ;;  %876 = vmatmul.mubr.bf16.gmra.mxu1 %v1251_v16 }
 0x265   : > { %v763_v61 = vpack.c.bf16 %v461_v26, %v460_v23  ;;  %v789_v20 = vpop.permute.xlu0 %788 }
 0x266   : > { %v736_v3 = vpop.permute.xlu1 %735 }
 0x267   : > { %894 = vmatprep.subr.bf16.mxu0 %v763_v61  ;;  %v747_v52 = vsel %vm741_vm14, %v736_v3, %v2410_v22  ;;  %v743_v21 = vsel %vm741_vm14, %v2410_v22, %v736_v3  ;;  %v1254_v22 = vld [vmem:[%s2334_s5] sm:$0xff]  }
 0x268   : > { %895 = vmatpush1.bf16.msra.mxu0 %v763_v61  ;;  %v753_v32 = vmul.f32 %v747_v52, %v2092_v18  ;;  %v752_v54 = vmul.f32 %v743_v21, %v1720_v13  ;;  %v2413_v18 = vmov 0   ;;  %v1255_v52 = vld [vmem:[%s2334_s5 + $0x8] sm:$0xff]  }
 0x269   : > { %896 = vmatprep.subr.bf16.mxu0 %v2411_v47  ;;  %v779_v46 = vpop.permute.xlu0 %778 }
 0x26a   : > { %v759_v27 = vpack.c.bf16 %v753_v32, %v751_v41  ;;  %v758_v44 = vpack.c.bf16 %v752_v54, %v750_v4  ;;  %v794_v5 = vpop.permute.xlu1 %793  ;;  %v1256_v32 = vld [vmem:[%s1516_s15] sm:$0xff]  ;;  %v1257_v4 = vld [vmem:[%s1516_s15 + $0x8] sm:$0xff] }
 0x26c   : > { %897 = vmatpush1.bf16.msra.mxu0 %v2411_v47 }
 0x26d   : > { %898 = vmatprep.subr.bf16.mxu0 %v761_v24  ;;  %v962_v47 = vpop.permute.xlu0 %961 }
 0x26e   : > { %v784_v33 = vpop.permute.xlu1 %783 }
 0x270   : > { %899 = vmatpush1.bf16.msra.mxu0 %v760_v29 }
 0x271   : > { %900 = vmatprep.subr.bf16.mxu0 %v759_v27 }
 0x272   : > { %v967_v54 = vpop.permute.xlu1 %966 }
 0x274   : > { %901 = vmatpush1.bf16.msra.mxu0 %v758_v44 }
 0x277   : > { %1170 = vmatmul.mubr.msk.bf16.vlgmr.msra.gmra.mxu0 %vm826_vm15, %v1252_v57 }
 0x278   : > { %928 = vmatprep.mubr.bf16.mxu0 %v2413_v18 }
 0x27f   : > { %1171 = vmatmul.mubr.msk.bf16.gmra.mxu0 %vm826_vm15, %v1253_v9  ;;  %v1258_v9 = vld [vmem:[%s1516_s15 + $0x10] sm:$0xff] }
 0x280   : > { %1027 = vmatprep.mubr.bf16.mxu0 %v2413_v18 }
 0x31b   : > { %v867_v13 = vpop.f32.mrf.mxu1 }
 0x31c   : > { %v868_v1 = vadd.f32 %v867_v13, %v779_v46 }
 0x31d   : > { %v869_v8 = vpop.f32.mrf.mxu1 }
 0x31e   : > { %v870_v40 = vadd.f32 %v869_v8, %v779_v46  ;;  %v1262_v46 = vld [vmem:[%s1516_s15 + $0x30] sm:$0xff] }
 0x31f   : > { %v871_v7 = vpop.f32.mrf.mxu1 }
 0x320   : > { %v872_v6 = vadd.f32 %v871_v7, %v784_v33  ;;  %v972_v7 = vpop.permute.xlu0 %971 }
 0x321   : > { %v873_v60 = vpop.f32.mrf.mxu1 }
 0x322   : > { %v874_v10 = vadd.f32 %v873_v60, %v784_v33 }
 0x323   : > { %v877_v29 = vpop.f32.mrf.mxu1 }
 0x324   : > { %v878_v53 = vadd.f32 %v877_v29, %v789_v20  ;;  %v1259_v29 = vld [vmem:[%s1516_s15 + $0x18] sm:$0xff] }
 0x325   : > { %v879_v36 = vpop.f32.mrf.mxu1 }
 0x326   : > { %v880_v12 = vadd.f32 %v879_v36, %v789_v20 }
 0x327   : > { %v881_v11 = vpop.f32.mrf.mxu1 }
 0x328   : > { %v882_v42 = vadd.f32 %v881_v11, %v794_v5  ;;  %v977_v11 = vpop.permute.xlu1 %976 }
 0x329   : > { %v883_v43 = vpop.f32.mrf.mxu1 }
 0x32a   : > { %v884_v45 = vadd.f32 %v883_v43, %v794_v5  ;;  %v1260_v5 = vld [vmem:[%s1516_s15 + $0x20] sm:$0xff] }
 0x337   : > { %v920_v24 = vpop.f32.mrf.mxu0 }
 0x338   : > { %v921_v28 = vadd.f32 %v920_v24, %v868_v1 }
 0x339   : > { %v922_v37 = vpop.f32.mrf.mxu0 }
 0x33a   : > { %v923_v19 = vadd.f32 %v922_v37, %v870_v40  ;;  %v939_v3 = vmax.f32 %v921_v28, 0.0 }
 0x33b   : > { %v924_v14 = vpop.f32.mrf.mxu0 }
 0x33c   : > { %v925_v39 = vadd.f32 %v924_v14, %v872_v6  ;;  %v940_v56 = vmax.f32 %v923_v19, 0.0 }
 0x33d   : > { %v926_v50 = vpop.f32.mrf.mxu0 }
 0x33e   : > { %v927_v0 = vadd.f32 %v926_v50, %v874_v10  ;;  %v941_v23 = vmax.f32 %v925_v39, 0.0 }
 0x33f   : > { %v930_v49 = vpop.f32.mrf.mxu0 }
 0x340   : > { %v931_v58 = vadd.f32 %v930_v49, %v878_v53  ;;  %v942_v62 = vmax.f32 %v927_v0, 0.0  ;;  %v951_v34 = vpack.c.bf16 %v941_v23, %v939_v3  ;;  %v1261_v49 = vld [vmem:[%s1516_s15 + $0x28] sm:$0xff] }
 0x341   : > { %v932_v2 = vpop.f32.mrf.mxu0 }
 0x342   : > { %v933_v51 = vadd.f32 %v932_v2, %v880_v12  ;;  %v943_v16 = vmax.f32 %v931_v58, 0.0  ;;  %v952_v61 = vpack.c.bf16 %v942_v62, %v940_v56 }
 0x343   : > { %v934_v30 = vpop.f32.mrf.mxu0 }
 0x344   : > { %v935_v63 = vadd.f32 %v934_v30, %v882_v42  ;;  %v944_v55 = vmax.f32 %v933_v51, 0.0  ;;  %v1263_v42 = vld [vmem:[%s1516_s15 + $0x38] sm:$0xff] }
 0x345   : > { %v936_v35 = vpop.f32.mrf.mxu0 }
 0x346   : > { %v937_v15 = vadd.f32 %v936_v35, %v884_v45  ;;  %v945_v59 = vmax.f32 %v935_v63, 0.0 }
 0x348   : > { %v946_v48 = vmax.f32 %v937_v15, 0.0  ;;  %v953_v26 = vpack.c.bf16 %v945_v59, %v943_v16 }
 0x34a   : > { %v954_v25 = vpack.c.bf16 %v946_v48, %v944_v55 }
 0x34c   : > { %1007 = vmatprep.subr.bf16.mxu0 %v954_v25 }
 0x34d   : > { %1008 = vmatpush1.bf16.msra.mxu0 %v953_v26 }
 0x34e   : > { %1009 = vmatprep.subr.bf16.mxu0 %v952_v61 }
 0x351   : > { %1010 = vmatpush1.bf16.msra.mxu0 %v951_v34 }
 0x354   : > { %1174 = vmatmul.mubr.msk.bf16.vlgmr.msra.gmra.mxu0 %vm377_vm0, %v1254_v22 }
 0x355   : > { %1037 = vmatprep.mubr.bf16.mxu0 %v2413_v18 }
 0x35c   : > { %1175 = vmatmul.mubr.msk.bf16.gmra.mxu0 %vm377_vm0, %v1255_v52 }
 0x414   : > { %v1029_v17 = vpop.f32.mrf.mxu0 }
 0x415   : > { %v1030_v31 = vadd.f32 %v1029_v17, %v962_v47 }
 0x416   : > { %v1031_v21 = vpop.f32.mrf.mxu0 }
 0x417   : > { %v1048_v38 = vadd.f32 %v1256_v32, %v1030_v31  ;;  %v1032_v41 = vadd.f32 %v1031_v21, %v962_v47 }
 0x418   : > { %v1033_v27 = vpop.f32.mrf.mxu0 }
 0x419   : > { %1056 = vst [vmem:[%s2261_s8] sm:$0xff] %v1048_v38  ;;  %v1049_v44 = vadd.f32 %v1257_v4, %v1032_v41  ;;  %v1034_v57 = vadd.f32 %v1033_v27, %v967_v54 }
 0x41a   : > { %v1035_v18 = vpop.f32.mrf.mxu0 }
 0x41b   : > { %1057 = vst [vmem:[%s2261_s8 + $0x8] sm:$0xff] %v1049_v44  ;;  %v1050_v13 = vadd.f32 %v1258_v9, %v1034_v57  ;;  %v1036_v8 = vadd.f32 %v1035_v18, %v967_v54 }
 0x41c   : > { %v1039_v60 = vpop.f32.mrf.mxu0 }
 0x41d   : > { %1058 = vst [vmem:[%s2261_s8 + $0x10] sm:$0xff] %v1050_v13  ;;  %v1051_v24 = vadd.f32 %v1259_v29, %v1036_v8  ;;  %v1040_v36 = vadd.f32 %v1039_v60, %v972_v7 }
 0x41e   : > { %v1041_v37 = vpop.f32.mrf.mxu0 }
 0x41f   : > { %1059 = vst [vmem:[%s2261_s8 + $0x18] sm:$0xff] %v1051_v24  ;;  %v1052_v14 = vadd.f32 %v1260_v5, %v1040_v36  ;;  %v1042_v20 = vadd.f32 %v1041_v37, %v972_v7 }
 0x420   : > { %v1043_v50 = vpop.f32.mrf.mxu0 }
 0x421   : > { %1060 = vst [vmem:[%s2261_s8 + $0x20] sm:$0xff] %v1052_v14  ;;  %v1053_v33 = vadd.f32 %v1261_v49, %v1042_v20  ;;  %v1044_v43 = vadd.f32 %v1043_v50, %v977_v11 }
 0x422   : > { %v1045_v2 = vpop.f32.mrf.mxu0 }
 0x423   : > { %1061 = vst [vmem:[%s2261_s8 + $0x28] sm:$0xff] %v1053_v33  ;;  %v1054_v10 = vadd.f32 %v1262_v46, %v1044_v43  ;;  %v1046_v12 = vadd.f32 %v1045_v2, %v977_v11 }
 0x425   : > { %1062 = vst [vmem:[%s2261_s8 + $0x30] sm:$0xff] %v1054_v10  ;;  %v1055_v40 = vadd.f32 %v1263_v42, %v1046_v12 }
 0x427   : > { %1063 = vst [vmem:[%s2261_s8 + $0x38] sm:$0xff] %v1055_v40 }
 0x428   : > { %1305 = shalt.err (!%p1302_p10)
}
 0x429   : > { %s1306_s15 = scalar_lea.hbm %s2284_s19, 1024  ;;  %s1310_s20 = scalar_lea.hbm %s2336_s7, 2048 }
 0x42a   : > { %p1307_p0 = scmp.ne.s32.totalorder %s2284_s19, %s1306_s15  ;;  %p1311_p1 = scmp.lt.s32.totalorder %s2284_s19, %s2336_s7 }
 0x42b   : > { %p1312_p3 = scmp.lt.s32.totalorder %s1310_s20, %s1306_s15 }
 0x42c   : > { %p1308_p2 = pnand %p1307_p0, %p2414_p12 }
 0x42d   : > { %p1313_p6 = por %p1312_p3, %p1311_p1 }
 0x42e   : > { %p1309_p9 = pneg %p1308_p2 }
 0x430   : > { %p1314_p11 = pnand %p1313_p6, %p1309_p9 }
 0x432   : > { %1317 = shalt.err (!%p1314_p11)
}
 0x433   : > { %s1372_s28 = smov 256  }
 0x434   : > { %1185 = dma.vmem_to_hbm [thread:$0]  (%p2414_p12), %s2277_s11, 1024, %s2284_s19, %s1065_s21, %s1372_s28, %s1372_s28, %s1364_s23  }
 0x435 PF: > { %s1093_s9 = sand.u32 1, %s1344_s24   ;;  %p2415_p13 = scmp.ne.s32.totalorder %s2361_s14, 0 }
 0x436   : > { %p2416_p4 = scmp.ge.s32.totalorder %s1356_s27, 2  ;;  %s1094_s16 = scalar_lea.sflag [#allocation4], %s1093_s9 }
 0x438   : > { %p1192_p5 = pnand %p2416_p4, %p2415_p13 }
 0x43a   : > { %p1193_p7 = pneg %p1192_p5 }
 0x43c   : > { %1339 = dma.done.wait (%p1193_p7), %s1094_s16, 1024  }
 0x43d   : > { %1341 = vsyncadd (%p1193_p7), %s1094_s16, 4294966272  ;;  %p20_p8 = scmp.ge.s32.totalorder %s1438_s30, 4   ;;  %s2417_s24 = smov %s1348_s25 }
 0x43e   : > { %s2418_s25 = smov %s1352_s26  ;;  %s2419_s26 = smov %s1450_s10 }
 0x43f   : > { %s2420_s27 = smov %s1438_s30  ;;  %22 = sbr.rel (!%p20_p8) target bundleno = 5 (0x5), region = 93 }
 0x444   :  { %1099 = vsyncpa [#allocation3], 1 }
 0x445   :  { %1101 = vsyncpa [#allocation3 + $0x1], 1 }
 0x446   :  { %1102 = vsyncpa [#allocation4], 1 }
 0x447   :  { %1104 = vsyncpa [#allocation4 + $0x1], 1 }

</bundles_post_ra>
